<compile_context>
chip_gen: v7x
topology: tpu7x:2x2x1
jax: 0.10.0
libtpu: 0.0.40
codegen_flags: <defaults>
</compile_context>

<pallas_src>
import functools

import jax
import jax.numpy as jnp
from jax import lax
from jax.experimental import pallas as pl
from jax.experimental.pallas import tpu as pltpu


def _lora_conv_kernel(x_ref, wcat_t_ref, wu_t_ref, b_ref, o_ref, *,
                      KH, KW, TH, Wout, Cout):
    """Fused base-conv + LoRA tile kernel.

    x_ref      : (TH+KH-1, Wp, Cin)    padded NHWC input row-tile (with halo), VMEM
    wcat_t_ref : (Cout+R, KH*KW*Cin)   [base | lora-down] weight, transposed, VMEM
    wu_t_ref   : (Cout, R)             LoRA up 1x1 weight (lora_scale folded in), VMEM
    b_ref      : (Cout, 1)             base conv bias (f32), VMEM
    o_ref      : (Cout, TH*Wout)       output tile, channel-major (lane-dense), VMEM
    """
    Cin = x_ref.shape[-1]
    M = TH * Wout
    x = x_ref[...]

    # im2col: gather the KH*KW taps along the channel (lane) axis, once per tile.
    cols = [x[kh:kh + TH, kw:kw + Wout, :] for kh in range(KH) for kw in range(KW)]
    patches = jnp.concatenate(cols, axis=-1).reshape(M, KH * KW * Cin)   # (M, K)

    # One MXU matmul covers BOTH the base conv and the LoRA down conv
    # (K = KH*KW*Cin).  "NT" form -> result is already channel-major/lane-dense.
    acc_t = lax.dot_general(
        wcat_t_ref[...], patches,
        dimension_numbers=(((1,), (1,)), ((), ())),
        preferred_element_type=jnp.float32)                              # (Cout+R, M)

    main_t = acc_t[:Cout, :]                                             # (Cout, M)
    down_t = acc_t[Cout:, :]                                             # (R, M)

    # LoRA up (1x1 conv) == tiny matmul; lora_scale already folded into wu_t.
    up_t = jnp.dot(wu_t_ref[...], down_t,
                   preferred_element_type=jnp.float32)                   # (Cout, M)

    out_t = main_t + up_t + b_ref[...].astype(jnp.float32)               # bias bcast over lanes
    o_ref[...] = out_t.astype(o_ref.dtype)


def _pick_row_tile(Hout, Wout, Wp, Cin, KH, itemsize, requested=None,
                   target_tile_bytes=4 << 20):
    """Output rows per tile.  When actually tiling (TH < Hout) we require:
    TH divides Hout, TH % 8 == 0 and (TH*Wout) % 128 == 0 (aligned, lane-dense
    output blocks).  Otherwise fall back to the whole height."""
    def ok(th):
        return (th < Hout and Hout % th == 0 and th % 8 == 0
                and (th * Wout) % 128 == 0)

    if requested is not None:
        if requested >= Hout:
            return Hout
        if ok(requested):
            return requested
    cands = sorted({th for th in range(8, Hout, 8) if ok(th)} | {Hout}, reverse=True)
    for th in cands:   # biggest tile that keeps the haloed input tile modest
        if (th + KH - 1) * Wp * Cin * itemsize <= target_tile_bytes:
            return th
    return cands[-1]


def monkey_patch_lora_conv2d(x_nchw, w_main, b_main, w_down, w_up, *,
                             padding=1, lora_scale=1.0, row_tile=None):
    """y = conv2d(x) + lora_scale * up(down(x)) with PyTorch-layout tensors.

    x_nchw : (N, Cin, H, W)
    w_main : (Cout, Cin, KH, KW)   base nn.Conv2d weight
    b_main : (Cout,)               base nn.Conv2d bias
    w_down : (R, Cin, KH, KW)      LoRA down conv weight
    w_up   : (Cout, R, 1, 1)       LoRA up 1x1 conv weight
    returns: (N, Cout, Hout, Wout)
    """
    N, Cin, H, W = x_nchw.shape
    Cout, _, KH, KW = w_main.shape
    R = w_down.shape[0]
    orig_dtype = x_nchw.dtype

    Hout = H + 2 * padding - KH + 1   # stride 1 only
    Wout = W + 2 * padding - KW + 1
    Hp, Wp = H + 2 * padding, W + 2 * padding

    # --- activation prep (glue): NCHW -> NHWC, spatial pad, per-tile halo rows.
    x = jnp.transpose(x_nchw, (0, 2, 3, 1))
    x = jnp.pad(x, ((0, 0), (padding, padding), (padding, padding), (0, 0)))

    TH = _pick_row_tile(Hout, Wout, Wp, Cin, KH, x.dtype.itemsize, requested=row_tile)
    HT = Hout // TH
    THK = TH + KH - 1
    if HT == 1:
        x_tiles = x[:, None]                                            # (N, 1, Hp, Wp, Cin)
    else:
        # Materialize the KH-1 halo rows once so the Pallas blocks stay Blocked.
        x_tiles = jnp.stack(
            [x[:, t * TH:t * TH + THK] for t in range(HT)], axis=1)     # (N, HT, THK, Wp, Cin)

    # --- weight prep (glue): OIHW -> HWIO, concat base|down, fold lora_scale into up.
    wm = jnp.transpose(w_main, (2, 3, 1, 0))                            # (KH, KW, Cin, Cout)
    wd = jnp.transpose(w_down, (2, 3, 1, 0))                            # (KH, KW, Cin, R)
    wcat_t = jnp.concatenate([wm, wd], axis=-1).reshape(KH * KW * Cin, Cout + R).T
    wu_t = lora_scale * w_up[:, :, 0, 0]                                # (Cout, R)
    bias = b_main.astype(jnp.float32).reshape(Cout, 1)

    M = TH * Wout
    kernel = functools.partial(_lora_conv_kernel,
                               KH=KH, KW=KW, TH=TH, Wout=Wout, Cout=Cout)

    # VMEM budget: double-buffered activation/output tiles + weights + headroom,
    # clamped to 3/4 of this generation's VMEM (v7x has only 64 MiB per core).
    in_tile_bytes = THK * Wp * Cin * x.dtype.itemsize
    out_tile_bytes = Cout * M * orig_dtype.itemsize
    w_bytes = (wcat_t.size + wu_t.size) * 4 + bias.size * 4
    est = 2 * (in_tile_bytes + out_tile_bytes) + w_bytes + (8 << 20)
    try:
        vmem_cap = pltpu.get_tpu_info().vmem_capacity_bytes
    except Exception:
        vmem_cap = 64 << 20
    vmem_limit = int(min(max(est, 16 << 20), vmem_cap * 3 // 4))

    out_flat = pl.pallas_call(
        kernel,
        out_shape=jax.ShapeDtypeStruct((N, Cout, Hout * Wout), orig_dtype),
        grid=(N, HT),
        in_specs=[
            pl.BlockSpec((None, None, THK, Wp, Cin), lambda n, t: (n, t, 0, 0, 0)),
            pl.BlockSpec((Cout + R, KH * KW * Cin), lambda n, t: (0, 0)),
            pl.BlockSpec((Cout, R), lambda n, t: (0, 0)),
            pl.BlockSpec((Cout, 1), lambda n, t: (0, 0)),
        ],
        out_specs=pl.BlockSpec((None, Cout, M), lambda n, t: (n, 0, t)),
        compiler_params=pltpu.CompilerParams(
            dimension_semantics=("parallel", "parallel"),
            vmem_limit_bytes=vmem_limit,
        ),
    )(x_tiles, wcat_t, wu_t, bias)

    # Output is already channel-major (flattened NCHW): just reshape.
    return out_flat.reshape(N, Cout, Hout, Wout)


def _reference(x_nchw, w_main, b_main, w_down, w_up, *, padding=1, lora_scale=1.0):
    """Plain-JAX reference matching the PyTorch forward."""
    pad = [(padding, padding), (padding, padding)]
    dn = ("NCHW", "OIHW", "NCHW")
    main = lax.conv_general_dilated(x_nchw, w_main, (1, 1), pad, dimension_numbers=dn)
    main = main + b_main[None, :, None, None]
    down = lax.conv_general_dilated(x_nchw, w_down, (1, 1), pad, dimension_numbers=dn)
    up = lax.conv_general_dilated(down, w_up, (1, 1), [(0, 0), (0, 0)], dimension_numbers=dn)
    return main + lora_scale * up


if __name__ == "__main__":
    # Shapes implied by the module: NCHW input, Conv2d(Cin=4, Cout=8, k=3, s=1, p=1), rank=4.
    N, Cin, H, W = 2, 4, 16, 16
    Cout, KH, KW = 8, 3, 3
    rank = 4
    lora_scale = 0.5

    key = jax.random.PRNGKey(0)
    k_x, k_wm, k_bm, k_wd, k_wu = jax.random.split(key, 5)

    x = jax.random.normal(k_x, (N, Cin, H, W), jnp.float32)
    w_main = jax.random.normal(k_wm, (Cout, Cin, KH, KW), jnp.float32) * 0.1
    b_main = jax.random.normal(k_bm, (Cout,), jnp.float32) * 0.1
    # Module init: down ~ N(0, 1/rank); up is zero-init.  Use a small random up
    # instead of zeros so the LoRA path is actually exercised numerically.
    w_down = jax.random.normal(k_wd, (rank, Cin, KH, KW), jnp.float32) * (1.0 / rank)
    w_up = jax.random.normal(k_wu, (Cout, rank, 1, 1), jnp.float32) * 0.05

    out = monkey_patch_lora_conv2d(
        x, w_main, b_main, w_down, w_up,
        padding=1, lora_scale=lora_scale, row_tile=8)   # row_tile=8 -> grid (2, 2)
    out = jax.block_until_ready(out)

    ref = _reference(x, w_main, b_main, w_down, w_up, padding=1, lora_scale=lora_scale)
    assert out.shape == (N, Cout, H, W), out.shape
    max_err = float(jnp.max(jnp.abs(out - ref)))
    assert jnp.allclose(out, ref, atol=1e-4, rtol=1e-4), max_err

    print("KERNEL_OK")
</pallas_src>

<mosaic_0001>
module attributes {stable_mosaic.version = 11 : i64} {
  func.func @_lora_conv_kernel(%arg0: i32, %arg1: i32, %arg2: memref<1x1x10x18x4xf32, #tpu.memory_space<vmem>>, %arg3: memref<12x36xf32, #tpu.memory_space<vmem>>, %arg4: memref<8x4xf32, #tpu.memory_space<vmem>>, %arg5: memref<8x1xf32, #tpu.memory_space<vmem>>, %arg6: memref<1x8x128xf32, #tpu.memory_space<vmem>>) attributes {dimension_semantics = [#tpu.dimension_semantics<parallel>, #tpu.dimension_semantics<parallel>], iteration_bounds = array<i64: 2, 2>, scalar_prefetch = 0 : i64, scratch_operands = 0 : i64, tpu.core_type = #tpu.core_type<tc>, window_params = [{transform_indices = @transform_0, window_bounds = array<i64: 1, 1, 10, 18, 4>}, {pipeline_mode = #tpu.pipeline_mode<synchronous>, transform_indices = @transform_1, window_bounds = array<i64: 12, 36>}, {pipeline_mode = #tpu.pipeline_mode<synchronous>, transform_indices = @transform_2, window_bounds = array<i64: 8, 4>}, {pipeline_mode = #tpu.pipeline_mode<synchronous>, transform_indices = @transform_3, window_bounds = array<i64: 8, 1>}, {transform_indices = @transform_4, window_bounds = array<i64: 1, 8, 128>}]} {
    %c0 = arith.constant 0 : index
    %c0_0 = arith.constant 0 : index
    %c0_1 = arith.constant 0 : index
    %c0_2 = arith.constant 0 : index
    %c0_3 = arith.constant 0 : index
    %0 = vector.load %arg2[%c0, %c0_0, %c0_1, %c0_2, %c0_3] : memref<1x1x10x18x4xf32, #tpu.memory_space<vmem>>, vector<1x1x10x18x4xf32>
    %1 = vector.shape_cast %0 : vector<1x1x10x18x4xf32> to vector<10x18x4xf32>
    %2 = vector.extract_strided_slice %1 {offsets = [0, 0, 0], sizes = [8, 16, 4], strides = [1, 1, 1]} : vector<10x18x4xf32> to vector<8x16x4xf32>
    %3 = vector.extract_strided_slice %1 {offsets = [0, 1, 0], sizes = [8, 16, 4], strides = [1, 1, 1]} : vector<10x18x4xf32> to vector<8x16x4xf32>
    %4 = vector.extract_strided_slice %1 {offsets = [0, 2, 0], sizes = [8, 16, 4], strides = [1, 1, 1]} : vector<10x18x4xf32> to vector<8x16x4xf32>
    %5 = vector.extract_strided_slice %1 {offsets = [1, 0, 0], sizes = [8, 16, 4], strides = [1, 1, 1]} : vector<10x18x4xf32> to vector<8x16x4xf32>
    %6 = vector.extract_strided_slice %1 {offsets = [1, 1, 0], sizes = [8, 16, 4], strides = [1, 1, 1]} : vector<10x18x4xf32> to vector<8x16x4xf32>
    %7 = vector.extract_strided_slice %1 {offsets = [1, 2, 0], sizes = [8, 16, 4], strides = [1, 1, 1]} : vector<10x18x4xf32> to vector<8x16x4xf32>
    %8 = vector.extract_strided_slice %1 {offsets = [2, 0, 0], sizes = [8, 16, 4], strides = [1, 1, 1]} : vector<10x18x4xf32> to vector<8x16x4xf32>
    %9 = vector.extract_strided_slice %1 {offsets = [2, 1, 0], sizes = [8, 16, 4], strides = [1, 1, 1]} : vector<10x18x4xf32> to vector<8x16x4xf32>
    %10 = vector.extract_strided_slice %1 {offsets = [2, 2, 0], sizes = [8, 16, 4], strides = [1, 1, 1]} : vector<10x18x4xf32> to vector<8x16x4xf32>
    %11 = tpu.concatenate %2, %3, %4, %5, %6, %7, %8, %9, %10 in 2 : vector<8x16x4xf32>, vector<8x16x4xf32>, vector<8x16x4xf32>, vector<8x16x4xf32>, vector<8x16x4xf32>, vector<8x16x4xf32>, vector<8x16x4xf32>, vector<8x16x4xf32>, vector<8x16x4xf32> -> vector<8x16x36xf32>
    %12 = vector.shape_cast %11 : vector<8x16x36xf32> to vector<128x36xf32>
    %c0_4 = arith.constant 0 : index
    %c0_5 = arith.constant 0 : index
    %13 = vector.load %arg3[%c0_4, %c0_5] : memref<12x36xf32, #tpu.memory_space<vmem>>, vector<12x36xf32>
    %cst = arith.constant dense<0.000000e+00> : vector<12x128xf32>
    %14 = tpu.matmul %13, %12, %cst {dimension_numbers = #tpu.dot_dimension_numbers<[1], [1], [0], [0], [0, 0, 1, 0], [], []>} : vector<12x36xf32>, vector<128x36xf32>, vector<12x128xf32> -> vector<12x128xf32>
    %15 = vector.extract_strided_slice %14 {offsets = [0, 0], sizes = [8, 128], strides = [1, 1]} : vector<12x128xf32> to vector<8x128xf32>
    %16 = vector.extract_strided_slice %14 {offsets = [8, 0], sizes = [4, 128], strides = [1, 1]} : vector<12x128xf32> to vector<4x128xf32>
    %c0_6 = arith.constant 0 : index
    %c0_7 = arith.constant 0 : index
    %17 = vector.load %arg4[%c0_6, %c0_7] : memref<8x4xf32, #tpu.memory_space<vmem>>, vector<8x4xf32>
    %cst_8 = arith.constant dense<0.000000e+00> : vector<8x128xf32>
    %18 = tpu.matmul %17, %16, %cst_8 {dimension_numbers = #tpu.dot_dimension_numbers<[1], [0], [0], [1], [0, 0, 1, 1], [], []>} : vector<8x4xf32>, vector<4x128xf32>, vector<8x128xf32> -> vector<8x128xf32>
    %19 = arith.addf %15, %18 : vector<8x128xf32>
    %c0_9 = arith.constant 0 : index
    %c0_10 = arith.constant 0 : index
    %20 = vector.load %arg5[%c0_9, %c0_10] : memref<8x1xf32, #tpu.memory_space<vmem>>, vector<8x1xf32>
    %21 = vector.broadcast %20 : vector<8x1xf32> to vector<8x128xf32>
    %22 = arith.addf %19, %21 : vector<8x128xf32>
    %c0_11 = arith.constant 0 : index
    %c0_12 = arith.constant 0 : index
    %c0_13 = arith.constant 0 : index
    %23 = vector.load %arg6[%c0_11, %c0_12, %c0_13] : memref<1x8x128xf32, #tpu.memory_space<vmem>>, vector<1x8x128xf32>
    %24 = vector.shape_cast %23 : vector<1x8x128xf32> to vector<8x128xf32>
    %25 = vector.shape_cast %22 : vector<8x128xf32> to vector<1x8x128xf32>
    tpu.vector_store %arg6[%c0_11, %c0_12, %c0_13], %25 {strides = array<i32>} : memref<1x8x128xf32, #tpu.memory_space<vmem>>, vector<1x8x128xf32>,
    return
  }
  func.func @transform_0(%arg0: i32, %arg1: i32) -> (i32, i32, i32, i32, i32) {
    %c0_i32 = arith.constant 0 : i32
    %c0_i32_0 = arith.constant 0 : i32
    %c0_i32_1 = arith.constant 0 : i32
    %c0_i32_2 = arith.constant 0 : i32
    return %arg0, %arg1, %c0_i32, %c0_i32_0, %c0_i32_1 : i32, i32, i32, i32, i32
  }
  func.func @transform_1(%arg0: i32, %arg1: i32) -> (i32, i32) {
    %c0_i32 = arith.constant 0 : i32
    %c0_i32_0 = arith.constant 0 : i32
    %c0_i32_1 = arith.constant 0 : i32
    return %c0_i32, %c0_i32_0 : i32, i32
  }
  func.func @transform_2(%arg0: i32, %arg1: i32) -> (i32, i32) {
    %c0_i32 = arith.constant 0 : i32
    %c0_i32_0 = arith.constant 0 : i32
    %c0_i32_1 = arith.constant 0 : i32
    return %c0_i32, %c0_i32_0 : i32, i32
  }
  func.func @transform_3(%arg0: i32, %arg1: i32) -> (i32, i32) {
    %c0_i32 = arith.constant 0 : i32
    %c0_i32_0 = arith.constant 0 : i32
    %c0_i32_1 = arith.constant 0 : i32
    return %c0_i32, %c0_i32_0 : i32, i32
  }
  func.func @transform_4(%arg0: i32, %arg1: i32) -> (i32, i32, i32) {
    %c0_i32 = arith.constant 0 : i32
    %c0_i32_0 = arith.constant 0 : i32
    return %arg0, %c0_i32, %arg1 : i32, i32, i32
  }
}

</mosaic_0001>

<bundles_post_ra>
// kernel: tpu_custom_call.1
= control target key start
LH: loop header
LB: loop body
LE: loop exit
PB: predicated region body
PF: predicated region fallthrough
CT: control target
= control target key end

     0   :  { %9 = vsyncpa [#allocation3], 0  ;;  %s2558_s0 = inlined_call_operand.vmem [shape: f32[2,2,10,18,4], index: 0, kind: input, shape index: {}]   ;;  %s2559_s1 = inlined_call_operand.vmem [shape: f32[12,36], index: 1, kind: input, shape index: {}]   ;;  %s2560_s2 = inlined_call_operand.vmem [shape: f32[8,4], index: 2, kind: input, shape index: {}]   ;;  %s2561_s3 = inlined_call_operand.vmem [shape: f32[8,1], index: 3, kind: input, shape index: {}]   ;;  %s2562_s4 = inlined_call_operand.hbm [shape: f32[2,8,256], index: 4, kind: output, shape index: {}]  }
   0x1   :  { %11 = vsyncpa [#allocation3 + $0x1], 0  ;;  %s1900_s15 = smov 0   ;;  %s1902_s16 = smov 0  }
   0x2   :  { %s1904_s17 = smov 0   ;;  %s1906_s18 = smov 0  }
   0x3   :  { %s1908_s19 = smov 0   ;;  %s1910_s20 = smov 0  }
   0x4   :  { %s1912_s21 = smov 0   ;;  %s1914_s22 = smov 0  }
   0x5 LB: > { %s1222_s23 = sadd.s32 4294967295, %s1861_s22   ;;  %s1223_s24 = sadd.s32 4294967294, %s1861_s22   ;;  %s1861_s22 = sphi %s1914_s22, %s17_s22   ;;  %s1857_s21 = sphi %s1912_s21, %s2573_s21   ;;  %s1853_s20 = sphi %s1910_s20, %s2572_s20   ;;  %s1849_s19 = sphi %s1908_s19, %s2571_s19   ;;  %s1845_s18 = sphi %s1906_s18, %s2570_s18   ;;  %s1841_s17 = sphi %s1904_s17, %s2569_s17   ;;  %s1837_s16 = sphi %s1902_s16, %s2568_s16   ;;  %s1833_s15 = sphi %s1900_s15, %s2567_s15  }
   0x6   : > { %s26_s25 = sadd.s32 1, %s1853_s20  ;;  %s29_s26 = sadd.s32 1, %s1857_s21 }
   0x7   : > { %p27_p0 = scmp.ge.s32.totalorder %s26_s25, 2  ;;  %p139_p1 = scmp.ne.s32.totalorder %s1841_s17, %s1837_s16 }
   0x8   : > { %p140_p2 = scmp.eq.s32.totalorder %s1222_s23, 3  ;;  %p145_p5 = scmp.ne.s32.totalorder %s1837_s16, %s1833_s15 }
   0x9   : > { %s2575_s25 = smov (%p27_p0, %s26_s25), 0  ;;  %s2577_s26 = smov (!%p27_p0, %s29_s26), %s1857_s21 }
   0xa   : > { %s125_s27 = ssub.s32 %s1853_s20, %s2575_s25  ;;  %p1951_p3 = por %p140_p2, %p139_p1 }
   0xb   : > { %p31_p4 = scmp.ge.s32.totalorder %s2577_s26, 2  ;;  %p146_p6 = scmp.eq.s32.totalorder %s1223_s24, 3 }
   0xc   : > { %p1226_p7 = scmp.ge.s32.totalorder %s1861_s22, 1  ;;  %p185_p9 = scmp.lt.s32.totalorder %s1861_s22, 5 }
   0xd   : > { %s2579_s26 = smov (%p31_p4, %s2577_s26), 0  ;;  %p1960_p8 = por %p146_p6, %p145_p5 }
   0xe   : > { %s124_s30 = ssub.s32 %s1857_s21, %s2579_s26  ;;  %s129_s5 = sadd.s32 1, %s1841_s17 }
   0xf   : > { %s126_s6 = sor.u32 %s125_s27, %s124_s30  ;;  %p186_p10 = pnand %p1226_p7, %p185_p9 }
  0x10   : > { %p127_p11 = scmp.eq.s32.totalorder %s126_s6, 0  ;;  %p215_p12 = scmp.lt.s32.totalorder (!%p186_p10), %s1849_s19, 1  ;;  %vm278_vm0 = vcmask (!%p186_p10), 1046528   ;;  %vm367_vm1 = vcmask (!%p186_p10), 1045504   ;;  %vm770_vm2 = vcmask (!%p186_p10), 31744   ;;  %vm787_vm3 = vcmask (!%p186_p10), 64512  }
  0x11   : > { %189 = sbr.rel (%p186_p10) target bundleno = 735 (0x2df), region = 36  ;;  %p217_p13 = scmp.lt.s32.totalorder (!%p186_p10), %s1845_s18, 1  ;;  %vm804_vm4 = vcmask (!%p186_p10), 97280   ;;  %vm821_vm5 = vcmask (!%p186_p10), 130048   ;;  %vm908_vm6 = vcmask (!%p186_p10), 293888   ;;  %vm838_vm7 = vcmask (!%p186_p10), 162816  }
  0x12   : > { %s1969_s7 = scalar_select %p127_p11, %s1841_s17, %s129_s5  }
  0x13   : > { %s1863_s27 = smov (!%p186_p10), 12   ;;  %s1864_s30 = smov (!%p186_p10), 4   ;;  %vm855_vm8 = vcmask (!%p186_p10), 195584   ;;  %vm872_vm9 = vcmask (!%p186_p10), 228352   ;;  %vm889_vm10 = vcmask (!%p186_p10), 261120   ;;  %vm2326_vm11 = vmpackc.low (!%p186_p10), %vm908_vm6, %vm908_vm6  ;;  %vm1872_vm12 = vmmov (!%p186_p10), 0  }
  0x14   : > { %s1865_s5 = smov (!%p186_p10), 24   ;;  %s1866_s6 = smov (!%p186_p10), 8   ;;  %vm1042_vm13 = vcmask (!%p186_p10), 1043456  }
  0x18   : > { %s216_s8 = scalar_select %p215_p12, %s1849_s19, 1 }
  0x19   : > { %s218_s9 = scalar_select %p217_p13, %s1845_s18, 1 }
  0x1a   : > { %s1363_s10 = smul.u32 60, %s216_s8  ;;  %s1867_s8 = smov 16  }
  0x1b   : > { %s1362_s11 = smul.u32 30, %s218_s9  ;;  %s1868_s9 = smov 20  }
  0x1d   : > { %s221_s12 = sadd.s32 %s1363_s10, %s1362_s11  ;;  %s1869_s10 = smov 32  }
  0x1e   : > { %s1228_s13 = sshll.u32 %s221_s12, 3  ;;  %s1870_s11 = smov 28  }
  0x1f   : > { %s1978_s24 = scalar_lea.vmem %s2558_s0, %s1228_s13 }
  0x20   : > { %v1981_v0 = vld [vmem:[%s1978_s24 + $0x18] sm:$0xff]  ;;  %v1984_v1 = vld [vmem:[%s1978_s24 + $0x20] sm:$0xff]  ;;  %v1992_v4 = vld [vmem:[%s1978_s24 + $0x8] sm:$0xff] }
  0x21   : > { %v1987_v2 = vld [vmem:[%s1978_s24] sm:$0xff]  ;;  %v1446_v3 = vpack.i.bf16 %v1984_v1, %v1981_v0  ;;  %v226_v5 = vld [vmem:[%s1978_s24 + $0x10] sm:$0x3]  ;;  %v280_v9 = vrot.slane %v1992_v4, 1  ;;  %v2002_v12 = vld [vmem:[%s1978_s24 + $0x38] sm:$0xff]  ;;  %v369_v13 = vrot.slane %v1992_v4, 2 }
  0x22   : > { %v279_v6 = vrot.slane %v1987_v2, 1  ;;  %v1997_v7 = vld [vmem:[%s1978_s24 + $0x30] sm:$0xff]  ;;  %v368_v8 = vrot.slane %v1987_v2, 2  ;;  %v282_v10 = vrot.slane %v226_v5, 1  ;;  %v371_v11 = vrot.slane %v226_v5, 2  ;;  %v2040_v46 = vld [vmem:[%s1978_s24 + $0x48] sm:$0xff] }
  0x23   : > { %1447 = vrot.lane.b32.xlu1 %v1446_v3, %s1863_s27  ;;  %v2008_v14 = vpack.i.bf16 %v2002_v12, %v1997_v7  ;;  %v229_v15 = vld [vmem:[%s1978_s24 + $0x28] sm:$0x3]  ;;  %v284_v16 = vrot.slane %v1981_v0, 1  ;;  %v285_v17 = vrot.slane %v1984_v1, 1  ;;  %v373_v18 = vrot.slane %v1981_v0, 2  ;;  %v2043_v47 = vld [vmem:[%s1978_s24 + $0x50] sm:$0xff] }
  0x24   : > { %v281_v19 = vsel %vm278_vm0, %v279_v6, %v280_v9  ;;  %v283_v20 = vsel %vm278_vm0, %v280_v9, %v282_v10  ;;  %v370_v21 = vsel %vm367_vm1, %v368_v8, %v369_v13  ;;  %v372_v22 = vsel %vm367_vm1, %v369_v13, %v371_v11  ;;  %v232_v26 = vld [vmem:[%s1978_s24 + $0x40] sm:$0x3]  ;;  %v235_v49 = vld [vmem:[%s1978_s24 + $0x58] sm:$0x3]  ;;  %v2059_v56 = vld [vmem:[%s1978_s24 + $0x90] sm:$0xff] }
  0x25   : > { %v1456_v23 = vpack.i.bf16 %v283_v20, %v281_v19  ;;  %v286_v24 = vsel %vm278_vm0, %v284_v16, %v285_v17  ;;  %v287_v25 = vrot.slane %v229_v15, 1  ;;  %v1461_v27 = vpack.i.bf16 %v372_v22, %v370_v21  ;;  %v2066_v61 = vld [vmem:[%s1978_s24 + $0x60] sm:$0xff]  ;;  %v2076_v63 = vld [vmem:[%s1978_s24 + $0x98] sm:$0xff]  ;;  %v2080_v5 = vld [vmem:[%s1978_s24 + $0x68] sm:$0xff] }
  0x26   : > { %v374_v28 = vrot.slane %v1984_v1, 2  ;;  %v376_v29 = vrot.slane %v229_v15, 2  ;;  %v289_v30 = vrot.slane %v1997_v7, 1  ;;  %v290_v32 = vrot.slane %v2002_v12, 1  ;;  %v244_v3 = vld [vmem:[%s1978_s24 + $0xa0] sm:$0x3] }
  0x27   : > { %1457 = vrot.lane.b32.xlu0 %v1456_v23, %s1864_s30  ;;  %1452 = vrot.lane.b32.xlu1 %v2008_v14, %s1865_s5  ;;  %v288_v31 = vsel %vm278_vm0, %v285_v17, %v287_v25  ;;  %v378_v33 = vrot.slane %v1997_v7, 2  ;;  %v379_v34 = vrot.slane %v2002_v12, 2  ;;  %v292_v38 = vrot.slane %v232_v26, 1  ;;  %v2088_v10 = vld [vmem:[%s1978_s24 + $0x70] sm:$0x3] }
  0x28   : > { %v1466_v35 = vpack.i.bf16 %v288_v31, %v286_v24  ;;  %v375_v36 = vsel %vm367_vm1, %v373_v18, %v374_v28  ;;  %v377_v37 = vsel %vm367_vm1, %v374_v28, %v376_v29  ;;  %v381_v40 = vrot.slane %v232_v26, 2  ;;  %v2095_v18 = vld [vmem:[%s1978_s24 + $0xa8] sm:$0xff]  ;;  %v2107_v22 = vld [vmem:[%s1978_s24 + $0xb0] sm:$0xff]  ;;  %v247_v23 = vld [vmem:[%s1978_s24 + $0xb8] sm:$0x3] }
  0x29   : > { %v380_v39 = vsel %vm367_vm1, %v378_v33, %v379_v34  ;;  %v1471_v41 = vpack.i.bf16 %v377_v37, %v375_v36  ;;  %v291_v43 = vsel %vm278_vm0, %v289_v30, %v290_v32  ;;  %v293_v44 = vsel %vm278_vm0, %v290_v32, %v292_v38  ;;  %v2128_v36 = vld [vmem:[%s1978_s24 + $0xc0] sm:$0xff] }
  0x2a   : > { %v382_v42 = vsel %vm367_vm1, %v379_v34, %v381_v40  ;;  %v2046_v48 = vpack.i.bf16 %v293_v44, %v291_v43  ;;  %v294_v50 = vrot.slane %v2040_v46, 1  ;;  %v295_v51 = vrot.slane %v2043_v47, 1  ;;  %v2134_v40 = vld [vmem:[%s1978_s24 + $0xc8] sm:$0xff] }
  0x2b   : > { %1462 = vrot.lane.b32.xlu0 %v1461_v27, %s1866_s6  ;;  %1467 = vrot.lane.b32.xlu1 %v1466_v35, %s1867_s8  ;;  %v2037_v45 = vpack.i.bf16 %v382_v42, %v380_v39  ;;  %v297_v52 = vrot.slane %v235_v49, 1  ;;  %v383_v53 = vrot.slane %v2040_v46, 2  ;;  %v384_v54 = vrot.slane %v2043_v47, 2 }
  0x2c   : > { %v386_v55 = vrot.slane %v235_v49, 2  ;;  %v296_v57 = vsel %vm278_vm0, %v294_v50, %v295_v51  ;;  %v2073_v62 = vpack.i.bf16 %v2043_v47, %v2040_v46  ;;  %v309_v6 = vrot.slane %v2059_v56, 1 }
  0x2d   : > { %v298_v58 = vsel %vm278_vm0, %v295_v51, %v297_v52  ;;  %v385_v59 = vsel %vm367_vm1, %v383_v53, %v384_v54  ;;  %v299_v11 = vrot.slane %v2066_v61, 1  ;;  %v310_v13 = vrot.slane %v2076_v63, 1  ;;  %v2146_v52 = vld [vmem:[%s1978_s24 + $0xe0] sm:$0xff] }
  0x2e   : > { %v387_v60 = vsel %vm367_vm1, %v384_v54, %v386_v55  ;;  %v2083_v8 = vpack.i.bf16 %v298_v58, %v296_v57  ;;  %v312_v15 = vrot.slane %v244_v3, 1  ;;  %v398_v16 = vrot.slane %v2059_v56, 2 }
  0x2f   : > { %1472 = vrot.lane.b32.xlu0 %v1471_v41, %s1868_s9  ;;  %1482 = vrot.lane.b32.xlu1 %v2037_v45, %s1869_s10  ;;  %v2085_v9 = vpack.i.bf16 %v387_v60, %v385_v59  ;;  %v399_v17 = vrot.slane %v2076_v63, 2  ;;  %v2103_v19 = vpack.i.bf16 %v2080_v5, %v2066_v61  ;;  %v300_v20 = vrot.slane %v2080_v5, 1  ;;  %v2157_v60 = vld [vmem:[%s1978_s24 + $0xd8] sm:$0xff] }
  0x30   : > { %v401_v21 = vrot.slane %v244_v3, 2  ;;  %v302_v24 = vrot.slane %v2088_v10, 1  ;;  %v311_v25 = vsel %vm278_vm0, %v309_v6, %v310_v13  ;;  %v314_v29 = vrot.slane %v2095_v18, 1 }
  0x31   : > { %v400_v26 = vsel %vm367_vm1, %v398_v16, %v399_v17  ;;  %v315_v31 = vrot.slane %v2107_v22, 1  ;;  %v317_v32 = vrot.slane %v247_v23, 1  ;;  %v403_v33 = vrot.slane %v2095_v18, 2 }
  0x32   : > { %v402_v28 = vsel %vm367_vm1, %v399_v17, %v401_v21  ;;  %v404_v34 = vrot.slane %v2107_v22, 2  ;;  %v388_v37 = vrot.slane %v2066_v61, 2  ;;  %v389_v49 = vrot.slane %v2080_v5, 2 }
  0x33   : > { %1477 = vrot.lane.b32.xlu0 %v2046_v48, %s1870_s11  ;;  %1492 = vrot.lane.b32.xlu1 %v1471_v41, %s1866_s6  ;;  %v2118_v30 = vpack.i.bf16 %v402_v28, %v400_v26  ;;  %v316_v38 = vsel %vm278_vm0, %v314_v29, %v315_v31  ;;  %v318_v39 = vsel %vm278_vm0, %v315_v31, %v317_v32  ;;  %v250_v41 = vld [vmem:[%s1978_s24 + $0xd0] sm:$0x3]  ;;  %v507_v51 = vrot.slane %v2128_v36, 1 }
  0x34   : > { %v2137_v42 = vpack.i.bf16 %v318_v39, %v316_v38  ;;  %v405_v43 = vsel %vm367_vm1, %v403_v33, %v404_v34  ;;  %v508_v53 = vrot.slane %v2134_v40, 1  ;;  %v510_v54 = vrot.slane %v250_v41, 1 }
  0x35   : > { %v560_v55 = vrot.slane %v2128_v36, 2  ;;  %v561_v57 = vrot.slane %v2134_v40, 2  ;;  %v391_v58 = vrot.slane %v2088_v10, 2  ;;  %v563_v59 = vrot.slane %v250_v41, 2 }
  0x36   : > { %v509_v3 = vsel %vm278_vm0, %v507_v51, %v508_v53  ;;  %v511_v6 = vsel %vm278_vm0, %v508_v53, %v510_v54  ;;  %v718_v21 = vrot.slane %v2146_v52, 2  ;;  %v717_v28 = vrot.slane %v2157_v60, 2 }
  0x37   : > { %1487 = vrot.lane.b32.xlu0 %v1466_v35, %s1864_s30  ;;  %1502 = vrot.lane.b32.xlu1 %v2046_v48, %s1867_s8  ;;  %v406_v35 = vrot.slane %v247_v23, 2  ;;  %v2164_v16 = vpack.i.bf16 %v511_v6, %v509_v3  ;;  %v564_v17 = vsel %vm367_vm1, %v561_v57, %v563_v59  ;;  %v390_v23 = vsel %vm367_vm1, %v388_v37, %v389_v49 }
  0x38   : > { %v392_v26 = vsel %vm367_vm1, %v389_v49, %v391_v58  ;;  %v2185_v33 = vsel %vm367_vm1, %v717_v28, %v718_v21  ;;  %v301_v39 = vsel %vm278_vm0, %v299_v11, %v300_v20  ;;  %v241_v49 = vld [vmem:[%s1978_s24 + $0x88] sm:$0x3]  ;;  %v1671_v3 = vpack.i.bf16 %v2107_v22, %v2095_v18 }
  0x39   : > { %v407_v44 = vsel %vm367_vm1, %v404_v34, %v406_v35  ;;  %v1561_v35 = vpack.i.bf16 %v392_v26, %v390_v23  ;;  %v307_v54 = vrot.slane %v241_v49, 1  ;;  %v1711_v6 = vpack.i.bf16 %v2134_v40, %v2128_v36 }
  0x3a   : > { %v2142_v50 = vpack.i.bf16 %v407_v44, %v405_v43  ;;  %v2212_v43 = vld [vmem:[%s1978_s24 + $0x78] sm:$0xff]  ;;  %v2215_v44 = vld [vmem:[%s1978_s24 + $0x80] sm:$0xff] }
  0x3b   : > { %1497 = vrot.lane.b32.xlu0 %v2008_v14, %s1863_s27  ;;  %1512 = vrot.lane.b32.xlu1 %v2073_v62, %s1865_s5  ;;  %v313_v14 = vsel %vm278_vm0, %v310_v13, %v312_v15  ;;  %v562_v13 = vsel %vm367_vm1, %v560_v55, %v561_v57  ;;  %v253_v15 = vld [vmem:[%s1978_s24 + $0xe8] sm:$0x3]  ;;  %v393_v10 = vrot.slane %v2212_v43, 2  ;;  %v394_v11 = vrot.slane %v2215_v44, 2 }
  0x3c   : > { %v2114_v27 = vpack.i.bf16 %v313_v14, %v311_v25  ;;  %v2173_v25 = vpack.i.bf16 %v564_v17, %v562_v13  ;;  %v664_v14 = vrot.slane %v2157_v60, 1  ;;  %v667_v29 = vrot.slane %v253_v15, 1 }
  0x3d   : > { %v720_v31 = vrot.slane %v253_v15, 2  ;;  %v304_v51 = vrot.slane %v2212_v43, 1  ;;  %v305_v53 = vrot.slane %v2215_v44, 1  ;;  %v906_v15 = vld [vmem:[%s2559_s1] sm:$0xff] }
  0x3e   : > { %1306 = vmatprep.mubr.msk.f32.mxu0 %vm908_vm6, %v906_v15 }
  0x3f   : > { %1507 = vrot.lane.b32.xlu0 %v2037_v45, %s1868_s9  ;;  %1522 = vrot.lane.b32.xlu1 %v2085_v9, %s1869_s10  ;;  %v2188_v34 = vsel %vm367_vm1, %v718_v21, %v720_v31  ;;  %v306_v57 = vsel %vm278_vm0, %v304_v51, %v305_v53  ;;  %v308_v58 = vsel %vm278_vm0, %v305_v53, %v307_v54 }
  0x40   : > { %v1761_v38 = vpack.i.bf16 %v2188_v34, %v2185_v33  ;;  %v1596_v59 = vpack.i.bf16 %v308_v58, %v306_v57  ;;  %v1038_v57 = vld [vmem:[%s2560_s2] sm:$0xff] }
  0x43   : > { %1517 = vrot.lane.b32.xlu0 %v2083_v8, %s1870_s11  ;;  %1532 = vrot.lane.b32.xlu1 %v2037_v45, %s1866_s6  ;;  %v665_v45 = vrot.slane %v2146_v52, 1 }
  0x45   : > { %v2179_v32 = vsel %vm278_vm0, %v664_v14, %v665_v45 }
  0x47   : > { %1527 = vrot.lane.b32.xlu0 %v2046_v48, %s1864_s30  ;;  %1542 = vrot.lane.b32.xlu1 %v2083_v8, %s1867_s8  ;;  %v2182_v48 = vsel %vm278_vm0, %v665_v45, %v667_v29 }
  0x48   : > { %v1756_v37 = vpack.i.bf16 %v2182_v48, %v2179_v32 }
  0x4b   : > { %1537 = vrot.lane.b32.xlu0 %v2073_v62, %s1863_s27  ;;  %1552 = vrot.lane.b32.xlu1 %v2103_v19, %s1865_s5  ;;  %v303_v62 = vsel %vm278_vm0, %v300_v20, %v302_v24  ;;  %v396_v20 = vrot.slane %v241_v49, 2  ;;  %v1591_v24 = vpack.i.bf16 %v2215_v44, %v2212_v43 }
  0x4c   : > { %v1556_v41 = vpack.i.bf16 %v303_v62, %v301_v39 }
  0x4d   : > { %v397_v55 = vsel %vm367_vm1, %v394_v11, %v396_v20 }
  0x4f   : > { %1547 = vrot.lane.b32.xlu0 %v2085_v9, %s1868_s9  ;;  %1562 = vrot.lane.b32.xlu1 %v1561_v35, %s1869_s10 }
  0x53   : > { %1557 = vrot.lane.b32.xlu0 %v1556_v41, %s1870_s11  ;;  %1572 = vrot.lane.b32.xlu1 %v2085_v9, %s1866_s6  ;;  %v395_v9 = vsel %vm367_vm1, %v393_v10, %v394_v11 }
  0x57   : > { %1567 = vrot.lane.b32.xlu0 %v2083_v8, %s1864_s30  ;;  %1582 = vrot.lane.b32.xlu1 %v1556_v41, %s1867_s8  ;;  %v1601_v8 = vpack.i.bf16 %v397_v55, %v395_v9 }
  0x5b   : > { %1577 = vrot.lane.b32.xlu0 %v2103_v19, %s1863_s27  ;;  %1592 = vrot.lane.b32.xlu1 %v1591_v24, %s1865_s5  ;;  %v1631_v19 = vpack.i.bf16 %v2076_v63, %v2059_v56 }
  0x5f   : > { %1587 = vrot.lane.b32.xlu0 %v1561_v35, %s1868_s9  ;;  %1602 = vrot.lane.b32.xlu1 %v1601_v8, %s1869_s10 }
  0x63   : > { %1597 = vrot.lane.b32.xlu0 %v1596_v59, %s1870_s11  ;;  %1612 = vrot.lane.b32.xlu1 %v1561_v35, %s1866_s6 }
  0x67   : > { %1607 = vrot.lane.b32.xlu0 %v1556_v41, %s1864_s30  ;;  %1622 = vrot.lane.b32.xlu1 %v1596_v59, %s1867_s8 }
  0x6b   : > { %1617 = vrot.lane.b32.xlu0 %v1591_v24, %s1863_s27  ;;  %1632 = vrot.lane.b32.xlu1 %v1631_v19, %s1865_s5 }
  0x6f   : > { %1627 = vrot.lane.b32.xlu0 %v1601_v8, %s1868_s9  ;;  %1642 = vrot.lane.b32.xlu1 %v2118_v30, %s1869_s10 }
  0x73   : > { %1637 = vrot.lane.b32.xlu0 %v2114_v27, %s1870_s11  ;;  %1652 = vrot.lane.b32.xlu1 %v1601_v8, %s1866_s6 }
  0x77   : > { %1647 = vrot.lane.b32.xlu0 %v1596_v59, %s1864_s30  ;;  %1662 = vrot.lane.b32.xlu1 %v2114_v27, %s1867_s8 }
  0x7b   : > { %1657 = vrot.lane.b32.xlu0 %v1631_v19, %s1863_s27  ;;  %1672 = vrot.lane.b32.xlu1 %v1671_v3, %s1865_s5 }
  0x7f   : > { %1667 = vrot.lane.b32.xlu0 %v2118_v30, %s1868_s9  ;;  %1682 = vrot.lane.b32.xlu1 %v2142_v50, %s1869_s10 }
  0x83   : > { %1677 = vrot.lane.b32.xlu0 %v2137_v42, %s1870_s11  ;;  %1692 = vrot.lane.b32.xlu1 %v2118_v30, %s1866_s6  ;;  %v1751_v30 = vpack.i.bf16 %v2146_v52, %v2157_v60 }
  0x87   : > { %1687 = vrot.lane.b32.xlu0 %v2114_v27, %s1864_s30  ;;  %1702 = vrot.lane.b32.xlu1 %v2137_v42, %s1867_s8 }
  0x8b   : > { %1697 = vrot.lane.b32.xlu0 %v1671_v3, %s1863_s27  ;;  %1712 = vrot.lane.b32.xlu1 %v1711_v6, %s1865_s5 }
  0x8f   : > { %1707 = vrot.lane.b32.xlu0 %v2142_v50, %s1868_s9  ;;  %1722 = vrot.lane.b32.xlu1 %v2173_v25, %s1869_s10 }
  0x93   : > { %1717 = vrot.lane.b32.xlu0 %v2164_v16, %s1870_s11  ;;  %1732 = vrot.lane.b32.xlu1 %v2142_v50, %s1866_s6  ;;  %s212_s6 = sand.u32 1, %s1837_s16  }
  0x95   : > { %v1448_v27 = vpop.permute.xlu1 %1447 }
  0x96   : > { %v1450_v21 = vunpack.i.h.bf16 %v1448_v27  ;;  %v1449_v23 = vunpack.i.l.bf16 %v1448_v27 }
  0x97   : > { %1727 = vrot.lane.b32.xlu0 %v2137_v42, %s1864_s30  ;;  %1742 = vrot.lane.b32.xlu1 %v2164_v16, %s1867_s8  ;;  %s1227_s8 = sshll.u32 %s212_s6, 3 }
  0x98   : > { %s214_s12 = scalar_lea.vmem [#allocation2], %s1227_s8 }
  0x99   : > { %v1458_v36 = vpop.permute.xlu0 %1457  ;;  %v1453_v40 = vpop.permute.xlu1 %1452  ;;  %s1141_s13 = sshll.u32 %s214_s12, 4  ;;  %s2507_s13 = int_to_ptr.vmem [resolvable:$true] %s1141_s13 }
  0x9a   : > { %v1460_v13 = vunpack.i.h.bf16 %v1458_v36  ;;  %v1459_v45 = vunpack.i.l.bf16 %v1458_v36  ;;  %v1454_v49 = vunpack.i.l.bf16 %v1453_v40 }
  0x9b   : > { %1737 = vrot.lane.b32.xlu0 %v1711_v6, %s1863_s27  ;;  %1752 = vrot.lane.b32.xlu1 %v1751_v30, %s1865_s5  ;;  %s1874_s27 = smov [#allocation2]  }
  0x9c   : > { %v772_v14 = vsel %vm770_vm2, %v1992_v4, %v1460_v13  ;;  %v771_v26 = vsel %vm770_vm2, %v1987_v2, %v1459_v45  ;;  %s1771_s30 = sshll.u32 %s1874_s27, 4  ;;  %s1772_s30 = int_to_ptr.vmem [resolvable:$false] %s1771_s30 }
  0x9d   : > { %v1463_v50 = vpop.permute.xlu0 %1462  ;;  %v1468_v42 = vpop.permute.xlu1 %1467  ;;  %s1773_s5 = scalar_lea.vmem %s1772_s30, 256  ;;  %p1774_p4 = scmp.lt.s32.totalorder %s2507_s13, %s1772_s30 }
  0x9e   : > { %v1465_v52 = vunpack.i.h.bf16 %v1463_v50  ;;  %v1464_v60 = vunpack.i.l.bf16 %v1463_v50  ;;  %v1470_v16 = vunpack.i.h.bf16 %v1468_v42  ;;  %v1469_v17 = vunpack.i.l.bf16 %v1468_v42 }
  0x9f   : > { %1747 = vrot.lane.b32.xlu0 %v2173_v25, %s1868_s9  ;;  %1762 = vrot.lane.b32.xlu1 %v1761_v38, %s1869_s10  ;;  %v1455_v38 = vunpack.i.h.bf16 %v1453_v40  ;;  %s1250_s9 = sshll.u32 %s1849_s19, 1  ;;  %s1767_s19 = scalar_lea.vmem %s2507_s13, 128 }
  0xa0   : > { %v788_v28 = vsel %vm787_vm3, %v771_v26, %v1464_v60  ;;  %v789_v29 = vsel %vm787_vm3, %v772_v14, %v1465_v52  ;;  %s1137_s10 = sadd.s32 %s1845_s18, %s1250_s9  ;;  %s1126_s18 = scalar_lea.sflag [#allocation3], %s212_s6 }
  0xa1   : > { %v805_v31 = vsel %vm804_vm4, %v788_v28, %v1449_v23  ;;  %v806_v35 = vsel %vm804_vm4, %v789_v29, %v1450_v21  ;;  %v1473_v4 = vpop.permute.xlu0 %1472  ;;  %v1483_v39 = vpop.permute.xlu1 %1482  ;;  %p1768_p0 = scmp.ne.s32.totalorder %s2507_s13, %s1767_s19  ;;  %p1775_p5 = scmp.lt.s32.totalorder %s1773_s5, %s1767_s19 }
  0xa2   : > { %v822_v2 = vsel %vm821_vm5, %v805_v31, %v1469_v17  ;;  %v823_v25 = vsel %vm821_vm5, %v806_v35, %v1470_v16  ;;  %v1475_v62 = vunpack.i.h.bf16 %v1473_v4  ;;  %v1474_v41 = vunpack.i.l.bf16 %v1473_v4 }
  0xa3   : > { %1757 = vrot.lane.b32.xlu0 %v1756_v37, %s1870_s11  ;;  %v1485_v11 = vunpack.i.h.bf16 %v1483_v39  ;;  %v1484_v20 = vunpack.i.l.bf16 %v1483_v39  ;;  %s1251_s11 = sshll.u32 %s1137_s10, 7  ;;  %p1769_p1 = pnand %p1768_p0, %p1951_p3 }
  0xa4   : > { %v839_v33 = vsel %vm838_vm7, %v822_v2, %v1474_v41  ;;  %v840_v34 = vsel %vm838_vm7, %v823_v25, %v1475_v62  ;;  %s2505_s24 = scalar_lea.hbm %s2562_s4, %s1251_s11  ;;  %p1776_p6 = por %p1775_p5, %p1774_p4 }
  0xa5   : > { %v1478_v10 = vpop.permute.xlu0 %1477  ;;  %v1493_v24 = vpop.permute.xlu1 %1492  ;;  %v856_v54 = vsel %vm855_vm8, %v839_v33, %v1454_v49  ;;  %v857_v32 = vsel %vm855_vm8, %v840_v34, %v1455_v38  ;;  %p1770_p2 = pneg %p1769_p1 }
  0xa6   : > { %v1480_v51 = vunpack.i.h.bf16 %v1478_v10  ;;  %v1479_v53 = vunpack.i.l.bf16 %v1478_v10  ;;  %v1495_v6 = vunpack.i.h.bf16 %v1493_v24  ;;  %v1494_v27 = vunpack.i.l.bf16 %v1493_v24 }
  0xa7   : > { %p1777_p7 = pnand %p1776_p6, %p1770_p2 }
  0xa8   : > { %v873_v48 = vsel %vm872_vm9, %v856_v54, %v1479_v53  ;;  %v874_v37 = vsel %vm872_vm9, %v857_v32, %v1480_v51 }
  0xa9   : > { %v1488_v9 = vpop.permute.xlu0 %1487  ;;  %v890_v55 = vsel %vm889_vm10, %v873_v48, %v1484_v20  ;;  %v891_v8 = vsel %vm889_vm10, %v874_v37, %v1485_v11  ;;  %v1503_v58 = vpop.permute.xlu1 %1502 }
  0xaa   : > { %v1490_v59 = vunpack.i.h.bf16 %v1488_v9  ;;  %v1489_v19 = vunpack.i.l.bf16 %v1488_v9  ;;  %v1314_v3 = vpack.c.bf16 %v891_v8, %v890_v55  ;;  %v1505_v52 = vunpack.i.h.bf16 %v1503_v58 }
  0xab   : > { %v1504_v60 = vunpack.i.l.bf16 %v1503_v58 }
  0xac   : > { %v774_v30 = vsel %vm770_vm2, %v1984_v1, %v1490_v59  ;;  %v773_v36 = vsel %vm770_vm2, %v1981_v0, %v1489_v19  ;;  %1316 = vmatprep.subr.msk.bf16.mxu0 %vm2326_vm11, %v1314_v3 }
  0xad   : > { %v1498_v40 = vpop.permute.xlu0 %1497  ;;  %1319 = vmatpush3.bf16.xpose.msk.msra.mxu0 %vm2326_vm11, %v1314_v3  ;;  %v1513_v13 = vpop.permute.xlu1 %1512  ;;  %v790_v42 = vsel %vm787_vm3, %v773_v36, %v1494_v27  ;;  %v791_v15 = vsel %vm787_vm3, %v774_v30, %v1495_v6 }
  0xae   : > { %v1500_v45 = vunpack.i.h.bf16 %v1498_v40  ;;  %v1499_v50 = vunpack.i.l.bf16 %v1498_v40  ;;  %v1515_v28 = vunpack.i.h.bf16 %v1513_v13  ;;  %v1514_v29 = vunpack.i.l.bf16 %v1513_v13 }
  0xb0   : > { %v807_v1 = vsel %vm804_vm4, %v790_v42, %v1499_v50  ;;  %v808_v0 = vsel %vm804_vm4, %v791_v15, %v1500_v45 }
  0xb1   : > { %v1508_v16 = vpop.permute.xlu0 %1507  ;;  %v1523_v17 = vpop.permute.xlu1 %1522  ;;  %v824_v14 = vsel %vm821_vm5, %v807_v1, %v1504_v60  ;;  %v825_v26 = vsel %vm821_vm5, %v808_v0, %v1505_v52 }
  0xb2   : > { %v1510_v21 = vunpack.i.h.bf16 %v1508_v16  ;;  %v1509_v23 = vunpack.i.l.bf16 %v1508_v16  ;;  %v1525_v39 = vunpack.i.h.bf16 %v1523_v17  ;;  %v1524_v2 = vunpack.i.l.bf16 %v1523_v17 }
  0xb4   : > { %v841_v31 = vsel %vm838_vm7, %v824_v14, %v1509_v23  ;;  %v842_v35 = vsel %vm838_vm7, %v825_v26, %v1510_v21 }
  0xb5   : > { %v1518_v4 = vpop.permute.xlu0 %1517  ;;  %v1533_v25 = vpop.permute.xlu1 %1532  ;;  %v858_v33 = vsel %vm855_vm8, %v841_v31, %v1514_v29  ;;  %v859_v34 = vsel %vm855_vm8, %v842_v35, %v1515_v28 }
  0xb6   : > { %v1520_v62 = vunpack.i.h.bf16 %v1518_v4  ;;  %v1519_v41 = vunpack.i.l.bf16 %v1518_v4  ;;  %v1535_v32 = vunpack.i.h.bf16 %v1533_v25  ;;  %v1534_v48 = vunpack.i.l.bf16 %v1533_v25 }
  0xb8   : > { %v875_v38 = vsel %vm872_vm9, %v858_v33, %v1519_v41  ;;  %v876_v49 = vsel %vm872_vm9, %v859_v34, %v1520_v62 }
  0xb9   : > { %v892_v10 = vsel %vm889_vm10, %v875_v38, %v1524_v2  ;;  %v893_v11 = vsel %vm889_vm10, %v876_v49, %v1525_v39  ;;  %v1528_v20 = vpop.permute.xlu0 %1527  ;;  %v1543_v24 = vpop.permute.xlu1 %1542 }
  0xba   : > { %v1320_v51 = vpack.c.bf16 %v893_v11, %v892_v10  ;;  %v1530_v53 = vunpack.i.h.bf16 %v1528_v20  ;;  %v1529_v54 = vunpack.i.l.bf16 %v1528_v20  ;;  %v1545_v6 = vunpack.i.h.bf16 %v1543_v24 }
  0xbb   : > { %v1544_v27 = vunpack.i.l.bf16 %v1543_v24 }
  0xbc   : > { %v776_v37 = vsel %vm770_vm2, %v2002_v12, %v1530_v53  ;;  %v775_v9 = vsel %vm770_vm2, %v1997_v7, %v1529_v54  ;;  %1322 = vmatprep.subr.msk.bf16.mxu0 %vm2326_vm11, %v1320_v51 }
  0xbd   : > { %v1538_v55 = vpop.permute.xlu0 %1537  ;;  %1325 = vmatpush3.bf16.xpose.msk.msra.mxu0 %vm2326_vm11, %v1320_v51  ;;  %v1553_v8 = vpop.permute.xlu1 %1552  ;;  %v792_v19 = vsel %vm787_vm3, %v775_v9, %v1534_v48  ;;  %v793_v3 = vsel %vm787_vm3, %v776_v37, %v1535_v32 }
  0xbe   : > { %v1540_v58 = vunpack.i.h.bf16 %v1538_v55  ;;  %v1539_v59 = vunpack.i.l.bf16 %v1538_v55  ;;  %v1555_v42 = vunpack.i.h.bf16 %v1553_v8  ;;  %v1554_v15 = vunpack.i.l.bf16 %v1553_v8 }
  0xc0   : > { %v809_v12 = vsel %vm804_vm4, %v792_v19, %v1539_v59  ;;  %v810_v7 = vsel %vm804_vm4, %v793_v3, %v1540_v58 }
  0xc1   : > { %v1548_v30 = vpop.permute.xlu0 %1547  ;;  %v1563_v36 = vpop.permute.xlu1 %1562  ;;  %v826_v45 = vsel %vm821_vm5, %v809_v12, %v1544_v27  ;;  %v827_v50 = vsel %vm821_vm5, %v810_v7, %v1545_v6 }
  0xc2   : > { %v1550_v40 = vunpack.i.h.bf16 %v1548_v30  ;;  %v1549_v13 = vunpack.i.l.bf16 %v1548_v30  ;;  %v1565_v0 = vunpack.i.h.bf16 %v1563_v36  ;;  %v1564_v16 = vunpack.i.l.bf16 %v1563_v36 }
  0xc4   : > { %v843_v52 = vsel %vm838_vm7, %v826_v45, %v1549_v13  ;;  %v844_v60 = vsel %vm838_vm7, %v827_v50, %v1550_v40 }
  0xc5   : > { %v1558_v1 = vpop.permute.xlu0 %1557  ;;  %v1573_v17 = vpop.permute.xlu1 %1572  ;;  %v860_v14 = vsel %vm855_vm8, %v843_v52, %v1554_v15  ;;  %v861_v26 = vsel %vm855_vm8, %v844_v60, %v1555_v42 }
  0xc6   : > { %v1560_v21 = vunpack.i.h.bf16 %v1558_v1  ;;  %v1559_v23 = vunpack.i.l.bf16 %v1558_v1  ;;  %v1575_v41 = vunpack.i.h.bf16 %v1573_v17  ;;  %v1574_v33 = vunpack.i.l.bf16 %v1573_v17 }
  0xc8   : > { %v877_v28 = vsel %vm872_vm9, %v860_v14, %v1559_v23  ;;  %v878_v29 = vsel %vm872_vm9, %v861_v26, %v1560_v21 }
  0xc9   : > { %v894_v31 = vsel %vm889_vm10, %v877_v28, %v1564_v16  ;;  %v895_v35 = vsel %vm889_vm10, %v878_v29, %v1565_v0  ;;  %v1568_v4 = vpop.permute.xlu0 %1567  ;;  %v1583_v39 = vpop.permute.xlu1 %1582 }
  0xca   : > { %v1326_v2 = vpack.c.bf16 %v895_v35, %v894_v31  ;;  %v1570_v25 = vunpack.i.h.bf16 %v1568_v4  ;;  %v1569_v62 = vunpack.i.l.bf16 %v1568_v4  ;;  %v1585_v53 = vunpack.i.h.bf16 %v1583_v39 }
  0xcb   : > { %v1584_v54 = vunpack.i.l.bf16 %v1583_v39 }
  0xcc   : > { %v778_v34 = vsel %vm770_vm2, %v2043_v47, %v1570_v25  ;;  %v777_v38 = vsel %vm770_vm2, %v2040_v46, %v1569_v62  ;;  %1328 = vmatprep.subr.msk.bf16.mxu0 %vm2326_vm11, %v1326_v2 }
  0xcd   : > { %v1578_v49 = vpop.permute.xlu0 %1577  ;;  %1331 = vmatpush3.bf16.xpose.msk.msra.mxu0 %vm2326_vm11, %v1326_v2  ;;  %v1593_v10 = vpop.permute.xlu1 %1592  ;;  %v794_v24 = vsel %vm787_vm3, %v777_v38, %v1574_v33  ;;  %v795_v51 = vsel %vm787_vm3, %v778_v34, %v1575_v41 }
  0xce   : > { %v1580_v11 = vunpack.i.h.bf16 %v1578_v49  ;;  %v1579_v20 = vunpack.i.l.bf16 %v1578_v49  ;;  %v1595_v58 = vunpack.i.h.bf16 %v1593_v10  ;;  %v1594_v59 = vunpack.i.l.bf16 %v1593_v10 }
  0xd0   : > { %v811_v47 = vsel %vm804_vm4, %v794_v24, %v1579_v20  ;;  %v812_v46 = vsel %vm804_vm4, %v795_v51, %v1580_v11 }
  0xd1   : > { %v1588_v32 = vpop.permute.xlu0 %1587  ;;  %v1603_v48 = vpop.permute.xlu1 %1602  ;;  %v828_v55 = vsel %vm821_vm5, %v811_v47, %v1584_v54  ;;  %v829_v8 = vsel %vm821_vm5, %v812_v46, %v1585_v53 }
  0xd2   : > { %v1590_v37 = vunpack.i.h.bf16 %v1588_v32  ;;  %v1589_v9 = vunpack.i.l.bf16 %v1588_v32  ;;  %v1605_v27 = vunpack.i.h.bf16 %v1603_v48  ;;  %v1604_v12 = vunpack.i.l.bf16 %v1603_v48 }
  0xd4   : > { %v845_v19 = vsel %vm838_vm7, %v828_v55, %v1589_v9  ;;  %v846_v3 = vsel %vm838_vm7, %v829_v8, %v1590_v37 }
  0xd5   : > { %v1598_v6 = vpop.permute.xlu0 %1597  ;;  %v1613_v7 = vpop.permute.xlu1 %1612  ;;  %v862_v40 = vsel %vm855_vm8, %v845_v19, %v1594_v59  ;;  %v863_v13 = vsel %vm855_vm8, %v846_v3, %v1595_v58 }
  0xd6   : > { %v1600_v30 = vunpack.i.h.bf16 %v1598_v6  ;;  %v1599_v36 = vunpack.i.l.bf16 %v1598_v6  ;;  %v1615_v17 = vunpack.i.h.bf16 %v1613_v7  ;;  %v1614_v21 = vunpack.i.l.bf16 %v1613_v7 }
  0xd8   : > { %v879_v45 = vsel %vm872_vm9, %v862_v40, %v1599_v36  ;;  %v880_v50 = vsel %vm872_vm9, %v863_v13, %v1600_v30 }
  0xd9   : > { %v896_v42 = vsel %vm889_vm10, %v879_v45, %v1604_v12  ;;  %v897_v15 = vsel %vm889_vm10, %v880_v50, %v1605_v27  ;;  %v1608_v52 = vpop.permute.xlu0 %1607  ;;  %v1623_v60 = vpop.permute.xlu1 %1622 }
  0xda   : > { %v1332_v1 = vpack.c.bf16 %v897_v15, %v896_v42  ;;  %v1610_v0 = vunpack.i.h.bf16 %v1608_v52  ;;  %v1609_v16 = vunpack.i.l.bf16 %v1608_v52  ;;  %v1625_v39 = vunpack.i.h.bf16 %v1623_v60 }
  0xdb   : > { %v1624_v2 = vunpack.i.l.bf16 %v1623_v60 }
  0xdc   : > { %v780_v23 = vsel %vm770_vm2, %v2080_v5, %v1610_v0  ;;  %v779_v14 = vsel %vm770_vm2, %v2066_v61, %v1609_v16  ;;  %1334 = vmatprep.subr.msk.bf16.mxu0 %vm2326_vm11, %v1332_v1 }
  0xdd   : > { %v1618_v26 = vpop.permute.xlu0 %1617  ;;  %1337 = vmatpush3.bf16.xpose.msk.msra.mxu0 %vm2326_vm11, %v1332_v1  ;;  %v1633_v28 = vpop.permute.xlu1 %1632  ;;  %v796_v35 = vsel %vm787_vm3, %v779_v14, %v1614_v21  ;;  %v797_v4 = vsel %vm787_vm3, %v780_v23, %v1615_v17 }
  0xde   : > { %v1620_v29 = vunpack.i.h.bf16 %v1618_v26  ;;  %v1619_v31 = vunpack.i.l.bf16 %v1618_v26  ;;  %v1635_v49 = vunpack.i.h.bf16 %v1633_v28  ;;  %v1634_v10 = vunpack.i.l.bf16 %v1633_v28 }
  0xe0   : > { %v813_v5 = vsel %vm804_vm4, %v796_v35, %v1619_v31  ;;  %v814_v61 = vsel %vm804_vm4, %v797_v4, %v1620_v29 }
  0xe1   : > { %v1628_v25 = vpop.permute.xlu0 %1627  ;;  %v1643_v62 = vpop.permute.xlu1 %1642  ;;  %v830_v34 = vsel %vm821_vm5, %v813_v5, %v1624_v2  ;;  %v831_v38 = vsel %vm821_vm5, %v814_v61, %v1625_v39 }
  0xe2   : > { %v1630_v41 = vunpack.i.h.bf16 %v1628_v25  ;;  %v1629_v33 = vunpack.i.l.bf16 %v1628_v25  ;;  %v1645_v51 = vunpack.i.h.bf16 %v1643_v62  ;;  %v1644_v53 = vunpack.i.l.bf16 %v1643_v62 }
  0xe4   : > { %v847_v11 = vsel %vm838_vm7, %v830_v34, %v1629_v33  ;;  %v848_v20 = vsel %vm838_vm7, %v831_v38, %v1630_v41 }
  0xe5   : > { %v1638_v24 = vpop.permute.xlu0 %1637  ;;  %v1653_v54 = vpop.permute.xlu1 %1652  ;;  %v864_v32 = vsel %vm855_vm8, %v847_v11, %v1634_v10  ;;  %v865_v48 = vsel %vm855_vm8, %v848_v20, %v1635_v49 }
  0xe6   : > { %v1640_v47 = vunpack.i.h.bf16 %v1638_v24  ;;  %v1639_v46 = vunpack.i.l.bf16 %v1638_v24  ;;  %v1655_v27 = vunpack.i.h.bf16 %v1653_v54  ;;  %v1654_v12 = vunpack.i.l.bf16 %v1653_v54 }
  0xe8   : > { %v881_v37 = vsel %vm872_vm9, %v864_v32, %v1639_v46  ;;  %v882_v9 = vsel %vm872_vm9, %v865_v48, %v1640_v47 }
  0xe9   : > { %v898_v55 = vsel %vm889_vm10, %v881_v37, %v1644_v53  ;;  %v899_v8 = vsel %vm889_vm10, %v882_v9, %v1645_v51  ;;  %v1648_v58 = vpop.permute.xlu0 %1647  ;;  %v1663_v59 = vpop.permute.xlu1 %1662 }
  0xea   : > { %v1338_v19 = vpack.c.bf16 %v899_v8, %v898_v55  ;;  %v1650_v3 = vunpack.i.h.bf16 %v1648_v58  ;;  %v1649_v6 = vunpack.i.l.bf16 %v1648_v58  ;;  %v1665_v15 = vunpack.i.h.bf16 %v1663_v59 }
  0xeb   : > { %v1664_v52 = vunpack.i.l.bf16 %v1663_v59 }
  0xec   : > { %v782_v7 = vsel %vm770_vm2, %v2215_v44, %v1650_v3  ;;  %v781_v30 = vsel %vm770_vm2, %v2212_v43, %v1649_v6  ;;  %1340 = vmatprep.subr.msk.bf16.mxu0 %vm2326_vm11, %v1338_v19 }
  0xed   : > { %v1658_v36 = vpop.permute.xlu0 %1657  ;;  %1343 = vmatpush3.bf16.xpose.msk.msra.mxu0 %vm2326_vm11, %v1338_v19  ;;  %v1673_v40 = vpop.permute.xlu1 %1672  ;;  %v798_v50 = vsel %vm787_vm3, %v781_v30, %v1654_v12  ;;  %v799_v42 = vsel %vm787_vm3, %v782_v7, %v1655_v27 }
  0xee   : > { %v1660_v13 = vunpack.i.h.bf16 %v1658_v36  ;;  %v1659_v45 = vunpack.i.l.bf16 %v1658_v36  ;;  %v1675_v23 = vunpack.i.h.bf16 %v1673_v40  ;;  %v1674_v14 = vunpack.i.l.bf16 %v1673_v40 }
  0xf0   : > { %v815_v44 = vsel %vm804_vm4, %v798_v50, %v1659_v45  ;;  %v816_v43 = vsel %vm804_vm4, %v799_v42, %v1660_v13 }
  0xf1   : > { %v1668_v60 = vpop.permute.xlu0 %1667  ;;  %v1683_v1 = vpop.permute.xlu1 %1682  ;;  %v832_v17 = vsel %vm821_vm5, %v815_v44, %v1664_v52  ;;  %v833_v21 = vsel %vm821_vm5, %v816_v43, %v1665_v15 }
  0xf2   : > { %v1670_v0 = vunpack.i.h.bf16 %v1668_v60  ;;  %v1669_v16 = vunpack.i.l.bf16 %v1668_v60  ;;  %v1685_v31 = vunpack.i.h.bf16 %v1683_v1  ;;  %v1684_v35 = vunpack.i.l.bf16 %v1683_v1 }
  0xf4   : > { %v849_v26 = vsel %vm838_vm7, %v832_v17, %v1669_v16  ;;  %v850_v28 = vsel %vm838_vm7, %v833_v21, %v1670_v0 }
  0xf5   : > { %v1678_v29 = vpop.permute.xlu0 %1677  ;;  %v1693_v4 = vpop.permute.xlu1 %1692  ;;  %v866_v5 = vsel %vm855_vm8, %v849_v26, %v1674_v14  ;;  %v867_v61 = vsel %vm855_vm8, %v850_v28, %v1675_v23 }
  0xf6   : > { %v1680_v39 = vunpack.i.h.bf16 %v1678_v29  ;;  %v1679_v2 = vunpack.i.l.bf16 %v1678_v29  ;;  %v1695_v20 = vunpack.i.h.bf16 %v1693_v4  ;;  %v1694_v24 = vunpack.i.l.bf16 %v1693_v4 }
  0xf8   : > { %v883_v25 = vsel %vm872_vm9, %v866_v5, %v1679_v2  ;;  %v884_v62 = vsel %vm872_vm9, %v867_v61, %v1680_v39 }
  0xf9   : > { %v900_v41 = vsel %vm889_vm10, %v883_v25, %v1684_v35  ;;  %v901_v33 = vsel %vm889_vm10, %v884_v62, %v1685_v31  ;;  %v1688_v34 = vpop.permute.xlu0 %1687  ;;  %v1703_v38 = vpop.permute.xlu1 %1702 }
  0xfa   : > { %v1344_v49 = vpack.c.bf16 %v901_v33, %v900_v41  ;;  %v1690_v10 = vunpack.i.h.bf16 %v1688_v34  ;;  %v1689_v11 = vunpack.i.l.bf16 %v1688_v34  ;;  %v1705_v9 = vunpack.i.h.bf16 %v1703_v38 }
  0xfb   : > { %v1704_v55 = vunpack.i.l.bf16 %v1703_v38 }
  0xfc   : > { %v784_v51 = vsel %vm770_vm2, %v2076_v63, %v1690_v10  ;;  %v783_v53 = vsel %vm770_vm2, %v2059_v56, %v1689_v11  ;;  %1346 = vmatprep.subr.msk.bf16.mxu0 %vm2326_vm11, %v1344_v49 }
  0xfd   : > { %v1698_v54 = vpop.permute.xlu0 %1697  ;;  %1349 = vmatpush3.bf16.xpose.msk.msra.mxu0 %vm2326_vm11, %v1344_v49  ;;  %v1713_v47 = vpop.permute.xlu1 %1712  ;;  %v800_v48 = vsel %vm787_vm3, %v783_v53, %v1694_v24  ;;  %v801_v37 = vsel %vm787_vm3, %v784_v51, %v1695_v20 }
  0xfe   : > { %v1700_v46 = vunpack.i.h.bf16 %v1698_v54  ;;  %v1699_v32 = vunpack.i.l.bf16 %v1698_v54  ;;  %v1715_v27 = vunpack.i.h.bf16 %v1713_v47  ;;  %v1714_v12 = vunpack.i.l.bf16 %v1713_v47 }
 0x100   : > { %v817_v63 = vsel %vm804_vm4, %v800_v48, %v1699_v32  ;;  %v818_v56 = vsel %vm804_vm4, %v801_v37, %v1700_v46 }
 0x101   : > { %v1708_v8 = vpop.permute.xlu0 %1707  ;;  %v1723_v58 = vpop.permute.xlu1 %1722  ;;  %v834_v3 = vsel %vm821_vm5, %v817_v63, %v1704_v55  ;;  %v835_v6 = vsel %vm821_vm5, %v818_v56, %v1705_v9 }
 0x102   : > { %v1710_v59 = vunpack.i.h.bf16 %v1708_v8  ;;  %v1709_v19 = vunpack.i.l.bf16 %v1708_v8  ;;  %v1725_v40 = vunpack.i.h.bf16 %v1723_v58  ;;  %v1724_v13 = vunpack.i.l.bf16 %v1723_v58  ;;  %v907_v8 = vld [vmem:[%s2559_s1 + $0x8] sm:$0xf] }
 0x103   : > { %v1871_v58 = vmov 0.0  }
 0x104   : > { %v851_v7 = vsel %vm838_vm7, %v834_v3, %v1709_v19  ;;  %v852_v30 = vsel %vm838_vm7, %v835_v6, %v1710_v59  ;;  %1309 = vmatprep.subr.mxu1 %v1871_v58  ;;  %1311 = vmatprep.mubr.msk.f32.mxu1 %vm1872_vm12, %v1871_v58  ;;  %v1117_v59 = vld [vmem:[%s2561_s3] sm:$0xff]  ;;  %v1873_v19 = vmov 0  }
 0x105   : > { %v1718_v36 = vpop.permute.xlu0 %1717  ;;  %v1733_v45 = vpop.permute.xlu1 %1732  ;;  %v868_v15 = vsel %vm855_vm8, %v851_v7, %v1714_v12  ;;  %v869_v52 = vsel %vm855_vm8, %v852_v30, %v1715_v27  ;;  %1766 = vset.pattern.permute.xlu0 %v1873_v19 }
 0x106   : > { %v1720_v50 = vunpack.i.h.bf16 %v1718_v36  ;;  %v1719_v42 = vunpack.i.l.bf16 %v1718_v36  ;;  %v1735_v14 = vunpack.i.h.bf16 %v1733_v45  ;;  %v1734_v26 = vunpack.i.l.bf16 %v1733_v45  ;;  %1120 = vperm.xlu0 %1766, %v1117_v59  }
 0x108   : > { %v885_v44 = vsel %vm872_vm9, %v868_v15, %v1719_v42  ;;  %v886_v43 = vsel %vm872_vm9, %v869_v52, %v1720_v50 }
 0x109   : > { %v902_v60 = vsel %vm889_vm10, %v885_v44, %v1724_v13  ;;  %v903_v1 = vsel %vm889_vm10, %v886_v43, %v1725_v40  ;;  %v1728_v0 = vpop.permute.xlu0 %1727  ;;  %v1743_v16 = vpop.permute.xlu1 %1742 }
 0x10a   : > { %v1350_v17 = vpack.c.bf16 %v903_v1, %v902_v60  ;;  %v1730_v21 = vunpack.i.h.bf16 %v1728_v0  ;;  %v1729_v23 = vunpack.i.l.bf16 %v1728_v0  ;;  %v1745_v61 = vunpack.i.h.bf16 %v1743_v16 }
 0x10b   : > { %v1744_v25 = vunpack.i.l.bf16 %v1743_v16 }
 0x10c   : > { %v786_v28 = vsel %vm770_vm2, %v2107_v22, %v1730_v21  ;;  %v785_v29 = vsel %vm770_vm2, %v2095_v18, %v1729_v23  ;;  %1352 = vmatprep.subr.msk.bf16.mxu0 %vm2326_vm11, %v1350_v17 }
 0x10d   : > { %v1738_v31 = vpop.permute.xlu0 %1737  ;;  %1355 = vmatpush3.bf16.xpose.msk.msra.mxu0 %vm2326_vm11, %v1350_v17  ;;  %v1753_v35 = vpop.permute.xlu1 %1752  ;;  %v802_v2 = vsel %vm787_vm3, %v785_v29, %v1734_v26  ;;  %v803_v5 = vsel %vm787_vm3, %v786_v28, %v1735_v14 }
 0x10e   : > { %v1740_v4 = vunpack.i.h.bf16 %v1738_v31  ;;  %v1739_v39 = vunpack.i.l.bf16 %v1738_v31  ;;  %v1755_v10 = vunpack.i.h.bf16 %v1753_v35  ;;  %v1754_v11 = vunpack.i.l.bf16 %v1753_v35 }
 0x110   : > { %v819_v22 = vsel %vm804_vm4, %v802_v2, %v1739_v39  ;;  %v820_v18 = vsel %vm804_vm4, %v803_v5, %v1740_v4 }
 0x111   : > { %v1748_v62 = vpop.permute.xlu0 %1747  ;;  %v1763_v34 = vpop.permute.xlu1 %1762  ;;  %v836_v38 = vsel %vm821_vm5, %v819_v22, %v1744_v25  ;;  %v837_v49 = vsel %vm821_vm5, %v820_v18, %v1745_v61 }
 0x112   : > { %v1750_v41 = vunpack.i.h.bf16 %v1748_v62  ;;  %v1749_v33 = vunpack.i.l.bf16 %v1748_v62  ;;  %v1765_v53 = vunpack.i.h.bf16 %v1763_v34  ;;  %v1764_v54 = vunpack.i.l.bf16 %v1763_v34 }
 0x114   : > { %v853_v20 = vsel %vm838_vm7, %v836_v38, %v1749_v33  ;;  %v854_v24 = vsel %vm838_vm7, %v837_v49, %v1750_v41 }
 0x115   : > { %v1758_v51 = vpop.permute.xlu0 %1757  ;;  %v870_v32 = vsel %vm855_vm8, %v853_v20, %v1754_v11  ;;  %v871_v48 = vsel %vm855_vm8, %v854_v24, %v1755_v10 }
 0x116   : > { %v1760_v47 = vunpack.i.h.bf16 %v1758_v51  ;;  %v1759_v46 = vunpack.i.l.bf16 %v1758_v51 }
 0x118   : > { %v887_v37 = vsel %vm872_vm9, %v870_v32, %v1759_v46  ;;  %v888_v9 = vsel %vm872_vm9, %v871_v48, %v1760_v47 }
 0x119   : > { %v904_v55 = vsel %vm889_vm10, %v887_v37, %v1764_v54  ;;  %v905_v63 = vsel %vm889_vm10, %v888_v9, %v1765_v53 }
 0x11a   : > { %v1356_v56 = vpack.c.bf16 %v905_v63, %v904_v55 }
 0x11c   : > { %1358 = vmatprep.subr.msk.bf16.mxu0 %vm2326_vm11, %v1356_v56 }
 0x11d   : > { %1361 = vmatpush3.bf16.xpose.msk.msra.mxu0 %vm2326_vm11, %v1356_v56 }
 0x124   : > { %1307 = vmatmul.mubr.msk.f32.vlgmr.msra.gmra.mrb[0].mxu0 %vm908_vm6, %v907_v8 }
 0x185   : > { %v1121_v12 = vpop.permute.xlu0 %1120 }
 0x1f7   : > { %v1308_v3 = vpop.f32.mrb[0].mxu0 }
 0x1f8   : > { %v1029_v6 = vpop.f32.mrb[1].mxu0  ;;  %1310 = vmatpush3.msk.msra.mxu1 %vm1042_vm13, %v1308_v3 }
 0x1f9   : > { %1312 = vmatmul.mubr.msk.f32.vlgmr.msra.gmra.mrb[0].mxu1 %vm770_vm2, %v1038_v57 }
 0x2cc   : > { %v1112_v27 = vpop.f32.mrb[0].mxu1 }
 0x2cd   : > { %v1116_v7 = vadd.f32 %v1112_v27, %v1029_v6  ;;  %v1313_v30 = vpop.f32.mrb[1].mxu1 }
 0x2cf   : > { %v1123_v36 = vadd.f32 %v1121_v12, %v1116_v7 }
 0x2d1   : > { %1124 = vst [vmem:[%s214_s12] sm:$0xff] %v1123_v36 }
 0x2d2   : > { %1780 = shalt.err (!%p1777_p7)
}
 0x2d3   : > { %s1781_s6 = scalar_lea.hbm %s2505_s24, 128  ;;  %s1785_s10 = scalar_lea.hbm %s2562_s4, 512 }
 0x2d4   : > { %p1782_p9 = scmp.ne.s32.totalorder %s2505_s24, %s1781_s6  ;;  %p1786_p12 = scmp.lt.u32.totalorder %s2505_s24, %s2562_s4 }
 0x2d5   : > { %p1787_p13 = scmp.lt.u32.totalorder %s1785_s10, %s1781_s6  ;;  %p1789_p1 = scmp.lt.u32.totalorder %s1781_s6, %s2505_s24 }
 0x2d6   : > { %p1783_p10 = pnand %p1782_p9, %p1951_p3 }
 0x2d7   : > { %p1788_p0 = por %p1787_p13, %p1786_p12 }
 0x2d8   : > { %p1784_p11 = pneg %p1783_p10 }
 0x2d9   : > { %p1790_p2 = por %p1789_p1, %p1788_p0 }
 0x2db   : > { %p1791_p4 = pnand %p1790_p2, %p1784_p11 }
 0x2dd   : > { %1794 = shalt.err (!%p1791_p4)
}
 0x2de   : > { %1364 = dma.vmem_to_hbm [thread:$0]  (%p1951_p3), %s2507_s13, 128, %s2505_s24, %s1126_s18  }
 0x2df PF: > { %p1370_p5 = scmp.ge.s32.totalorder %s1861_s22, 2  ;;  %s1153_s14 = sand.u32 1, %s1833_s15  }
 0x2e0   : > { %s1154_s23 = scalar_lea.sflag [#allocation3], %s1153_s14 }
 0x2e1   : > { %p1367_p6 = pnand %p1370_p5, %p1960_p8 }
 0x2e3   : > { %1828 = dma.done.wait (!%p1367_p6), %s1154_s23, 128  }
 0x2e4   : > { %1830 = vsyncadd (!%p1367_p6), %s1154_s23, 4294967168  ;;  %s17_s22 = sadd.s32 1, %s1861_s22   ;;  %s2567_s15 = smov %s1837_s16 }
 0x2e5   : > { %p14_p7 = scmp.ge.s32.totalorder %s17_s22, 6   ;;  %s2568_s16 = smov %s1841_s17 }
 0x2e6   : > { %s2569_s17 = smov %s1969_s7  ;;  %s2570_s18 = smov %s1853_s20 }
 0x2e7   : > { %s2571_s19 = smov %s1857_s21  ;;  %s2572_s20 = smov %s2575_s25 }
 0x2e8   : > { %s2573_s21 = smov %s2579_s26  ;;  %16 = sbr.rel (!%p14_p7) target bundleno = 5 (0x5), region = 71 }
 0x2ef   :  { %1159 = vsyncpa [#allocation3], 1 }
 0x2f0   :  { %1161 = vsyncpa [#allocation3 + $0x1], 1 }

</bundles_post_ra>
